<compile_context>
chip_gen: v6e
topology: v6e:2x2x1
jax: 0.10.0
libtpu: 0.0.40
codegen_flags: <defaults>
</compile_context>

<pallas_src>
import functools
import math

import numpy as np
import jax
import jax.numpy as jnp
from jax import lax
from jax.experimental import pallas as pl
from jax.experimental.pallas import tpu as pltpu

TM = 256                       # max row tile for matmul kernels
VMEM_LIMIT = 32 * 1024 * 1024  # scoped-VMEM budget; working sets stay < ~16 MiB (v7x-safe)


def _rup(n, m):
    return ((n + m - 1) // m) * m


def _pick_tiles(M, N, K):
    """Few, big grid steps: full-K / full-N tiles (all shapes here fit VMEM comfortably).
    If that leaves a single output block, halve the M tile so the "parallel" grid axes
    can shard across both v7x TensorCores."""
    tm = min(TM, _rup(M, 8))
    tn = N if (N <= 1024 or N % 1024 != 0) else 1024
    tk = K
    if pl.cdiv(M, tm) == 1 and pl.cdiv(N, tn) == 1 and M >= 16:
        tm = _rup((M + 1) // 2, 8)
    return tm, tn, tk


# ----------------------------------------------------------------------------- Pallas kernels
def _matmul_kernel(x_ref, w_ref, b_ref, o_ref, acc_ref, *, activation):
    """bf16 MXU matmul, f32 accumulation over the K grid axis; bias (+ReLU) fused."""
    @pl.when(pl.program_id(2) == 0)
    def _():
        acc_ref[...] = jnp.zeros_like(acc_ref)

    acc_ref[...] += jnp.dot(x_ref[...].astype(jnp.bfloat16),
                            w_ref[...].astype(jnp.bfloat16),
                            preferred_element_type=jnp.float32)

    @pl.when(pl.program_id(2) == pl.num_programs(2) - 1)
    def _():
        acc = acc_ref[...] + b_ref[...]
        if activation == "relu":
            acc = jnp.maximum(acc, 0.0)
        o_ref[...] = acc.astype(o_ref.dtype)


def linear_pallas(x, w, b, activation=None, out_dtype=jnp.float32):
    """x: (..., K) @ w: (K, N) + b, optional fused ReLU.  Inputs cast to bf16 in-kernel."""
    orig_shape = x.shape
    K, N = w.shape
    x2 = x.reshape(-1, K)                       # dtype kept; cast to bf16 happens in VMEM
    M = x2.shape[0]
    b2 = b.reshape(1, N).astype(jnp.float32)
    tm, tn, tk = _pick_tiles(M, N, K)
    grid = (pl.cdiv(M, tm), N // tn, K // tk)

    out = pl.pallas_call(
        functools.partial(_matmul_kernel, activation=activation),
        out_shape=jax.ShapeDtypeStruct((M, N), out_dtype),
        grid_spec=pltpu.PrefetchScalarGridSpec(
            num_scalar_prefetch=0,
            grid=grid,
            in_specs=[
                pl.BlockSpec((tm, tk), lambda i, j, k: (i, k)),
                pl.BlockSpec((tk, tn), lambda i, j, k: (k, j)),
                pl.BlockSpec((1, tn), lambda i, j, k: (0, j)),
            ],
            out_specs=pl.BlockSpec((tm, tn), lambda i, j, k: (i, j)),
            scratch_shapes=[pltpu.VMEM((tm, tn), jnp.float32)],
        ),
        compiler_params=pltpu.CompilerParams(
            dimension_semantics=("parallel", "parallel", "arbitrary"),
            vmem_limit_bytes=VMEM_LIMIT),
    )(x2, w, b2)
    return out.reshape(orig_shape[:-1] + (N,))


def _matmul_ln_kernel(x_ref, w_ref, b_ref, r_ref, g_ref, bt_ref, o_ref, acc_ref, *, eps):
    """(x @ w + b + residual) -> LayerNorm*gamma+beta, fused in the matmul epilogue."""
    @pl.when(pl.program_id(1) == 0)
    def _():
        acc_ref[...] = jnp.zeros_like(acc_ref)

    acc_ref[...] += jnp.dot(x_ref[...].astype(jnp.bfloat16),
                            w_ref[...].astype(jnp.bfloat16),
                            preferred_element_type=jnp.float32)

    @pl.when(pl.program_id(1) == pl.num_programs(1) - 1)
    def _():
        y = acc_ref[...] + b_ref[...] + r_ref[...].astype(jnp.float32)
        mean = jnp.mean(y, axis=-1, keepdims=True)
        c = y - mean
        var = jnp.mean(c * c, axis=-1, keepdims=True)
        o_ref[...] = (c * lax.rsqrt(var + eps) * g_ref[...] + bt_ref[...]).astype(o_ref.dtype)


def linear_ln_pallas(x, w, b, residual, gamma, beta, eps=1e-5):
    """LayerNorm(residual + x @ w + b).  Row-wise LN needs the full feature dim (tn == N)."""
    shp = residual.shape
    K, N = w.shape
    x2 = x.reshape(-1, K)
    r2 = residual.reshape(-1, N)
    M = x2.shape[0]
    tm, _, tk = _pick_tiles(M, N, K)
    grid = (pl.cdiv(M, tm), K // tk)

    out = pl.pallas_call(
        functools.partial(_matmul_ln_kernel, eps=eps),
        out_shape=jax.ShapeDtypeStruct((M, N), jnp.float32),
        grid_spec=pltpu.PrefetchScalarGridSpec(
            num_scalar_prefetch=0,
            grid=grid,
            in_specs=[
                pl.BlockSpec((tm, tk), lambda i, k: (i, k)),
                pl.BlockSpec((tk, N), lambda i, k: (k, 0)),
                pl.BlockSpec((1, N), lambda i, k: (0, 0)),
                pl.BlockSpec((tm, N), lambda i, k: (i, 0)),
                pl.BlockSpec((1, N), lambda i, k: (0, 0)),
                pl.BlockSpec((1, N), lambda i, k: (0, 0)),
            ],
            out_specs=pl.BlockSpec((tm, N), lambda i, k: (i, 0)),
            scratch_shapes=[pltpu.VMEM((tm, N), jnp.float32)],
        ),
        compiler_params=pltpu.CompilerParams(
            dimension_semantics=("parallel", "arbitrary"),
            vmem_limit_bytes=VMEM_LIMIT),
    )(x2, w, b.reshape(1, N).astype(jnp.float32), r2,
      gamma.reshape(1, N).astype(jnp.float32), beta.reshape(1, N).astype(jnp.float32))
    return out.reshape(shp)


def _groupnorm_kernel(x_ref, a_ref, at_ref, g_ref, b_ref, o_ref, *, inv_n, eps):
    """NHWC GroupNorm: group pooling via a (C,G) one-hot matmul, broadcast-back via (G,C)."""
    x = x_ref[...].astype(jnp.float32)                                     # (HWp, C)
    xa = jnp.dot(x, a_ref[...], preferred_element_type=jnp.float32)       # (HWp, G)
    x2a = jnp.dot(x * x, a_ref[...], preferred_element_type=jnp.float32)
    mean_g = jnp.sum(xa, axis=0, keepdims=True) * inv_n                    # (1, G)
    msq_g = jnp.sum(x2a, axis=0, keepdims=True) * inv_n
    var_g = jnp.maximum(msq_g - mean_g * mean_g, 0.0)
    mean = jnp.dot(mean_g, at_ref[...], preferred_element_type=jnp.float32)  # (1, C)
    var = jnp.dot(var_g, at_ref[...], preferred_element_type=jnp.float32)
    o_ref[...] = ((x - mean) * lax.rsqrt(var + eps) * g_ref[...] + b_ref[...]).astype(o_ref.dtype)


def group_norm_nhwc(x, gamma, beta, groups=32, eps=1e-5):
    B, H, W, C = x.shape
    HW = H * W
    cg = C // groups
    HWp = _rup(HW, 8)
    x3 = x.reshape(B, HW, C).astype(jnp.float32)
    if HWp != HW:
        x3 = jnp.pad(x3, ((0, 0), (0, HWp - HW), (0, 0)))    # only the tiny 2x2 level
    gidx = np.arange(C) // cg
    A = jnp.asarray((gidx[:, None] == np.arange(groups)[None, :]).astype(np.float32))  # (C, G)
    inv_n = 1.0 / float(HW * cg)
    out = pl.pallas_call(
        functools.partial(_groupnorm_kernel, inv_n=inv_n, eps=eps),
        out_shape=jax.ShapeDtypeStruct((B, HWp, C), jnp.float32),
        grid_spec=pltpu.PrefetchScalarGridSpec(
            num_scalar_prefetch=0,
            grid=(B,),
            in_specs=[pl.BlockSpec((None, HWp, C), lambda i: (i, 0, 0)),
                      pl.BlockSpec((C, groups), lambda i: (0, 0)),
                      pl.BlockSpec((groups, C), lambda i: (0, 0)),
                      pl.BlockSpec((1, C), lambda i: (0, 0)),
                      pl.BlockSpec((1, C), lambda i: (0, 0))],
            out_specs=pl.BlockSpec((None, HWp, C), lambda i: (i, 0, 0)),
        ),
        compiler_params=pltpu.CompilerParams(
            dimension_semantics=("parallel",), vmem_limit_bytes=VMEM_LIMIT),
    )(x3, A, A.T, gamma.reshape(1, C).astype(jnp.float32), beta.reshape(1, C).astype(jnp.float32))
    return out[:, :HW].reshape(B, H, W, C)


# ----------------------------------------------------------------------------- conv / resize helpers (NHWC)
def conv2d_nhwc(x, w_flat, b, ksize, stride=1, padding=0, relu=False, out_dtype=jnp.float32):
    """NHWC conv via bf16 im2col (single channel-concat, no transposes) + Pallas matmul.
    w_flat is pre-flattened (kh*kw*C, O) and pre-cast to bf16.
    TODO(synk): 3x3 convs could skip the patch buffer entirely with 9 shifted accumulating
    matmuls (tap index as an extra 'arbitrary' grid axis)."""
    B, H, W, C = x.shape
    act = "relu" if relu else None
    x = x.astype(jnp.bfloat16)          # keep the im2col buffer in bf16 (halves HBM traffic)
    if ksize == 1 and stride == 1 and padding == 0:
        out = linear_pallas(x.reshape(-1, C), w_flat, b, activation=act, out_dtype=out_dtype)
        return out.reshape(B, H, W, -1)
    xp = jnp.pad(x, ((0, 0), (padding, padding), (padding, padding), (0, 0)))
    Hp, Wp = H + 2 * padding, W + 2 * padding
    Ho = (Hp - ksize) // stride + 1
    Wo = (Wp - ksize) // stride + 1
    taps = [xp[:, i:i + stride * Ho:stride, j:j + stride * Wo:stride, :]
            for i in range(ksize) for j in range(ksize)]
    patches = jnp.concatenate(taps, axis=-1)                 # (B, Ho, Wo, kh*kw*C), bf16
    out = linear_pallas(patches.reshape(-1, ksize * ksize * C), w_flat, b,
                        activation=act, out_dtype=out_dtype)
    return out.reshape(B, Ho, Wo, -1)


def upsample2x_bilinear_align_corners_nhwc(x):
    # nn.Upsample(scale_factor=2, mode='bilinear', align_corners=True), NHWC (tiny tensors)
    B, H, W, C = x.shape
    Ho, Wo = 2 * H, 2 * W
    ys = jnp.linspace(0.0, H - 1, Ho)
    xs = jnp.linspace(0.0, W - 1, Wo)
    y0 = jnp.floor(ys).astype(jnp.int32); y1 = jnp.minimum(y0 + 1, H - 1); wy = ys - y0
    x0 = jnp.floor(xs).astype(jnp.int32); x1 = jnp.minimum(x0 + 1, W - 1); wx = xs - x0
    top = (x[:, y0, :, :] * (1 - wy)[None, :, None, None]
           + x[:, y1, :, :] * wy[None, :, None, None])
    out = (top[:, :, x0, :] * (1 - wx)[None, None, :, None]
           + top[:, :, x1, :] * wx[None, None, :, None])
    return out


def nearest_resize_mask(mask, Ho, Wo):
    B, Hin, Win = mask.shape
    yi = (jnp.arange(Ho) * (Hin / Ho)).astype(jnp.int32)
    xi = (jnp.arange(Wo) * (Win / Wo)).astype(jnp.int32)
    return mask[:, yi][:, :, xi]


def pos_embed_sine_flat(B, H, W, num_pos_feats, temperature=10000.0):
    y_embed = jnp.broadcast_to(jnp.arange(1, H + 1, dtype=jnp.float32)[None, :, None], (B, H, W))
    x_embed = jnp.broadcast_to(jnp.arange(1, W + 1, dtype=jnp.float32)[None, None, :], (B, H, W))
    dim_t = jnp.arange(num_pos_feats, dtype=jnp.float32)
    dim_t = temperature ** (2.0 * jnp.floor(dim_t / 2.0) / num_pos_feats)
    pos_x = x_embed[..., None] / dim_t
    pos_y = y_embed[..., None] / dim_t
    pos_x = jnp.stack([jnp.sin(pos_x[..., 0::2]), jnp.cos(pos_x[..., 1::2])], axis=4).reshape(B, H, W, -1)
    pos_y = jnp.stack([jnp.sin(pos_y[..., 0::2]), jnp.cos(pos_y[..., 1::2])], axis=4).reshape(B, H, W, -1)
    return jnp.concatenate([pos_y, pos_x], axis=3).reshape(B, H * W, -1)   # (B, HW, 2*npf)


# ----------------------------------------------------------------------------- deformable attention
def _ms_deform_attn_core(value, spatial_shapes, sampling_locations, attention_weights):
    """Dense bilinear sampling: per level build separable one-hot interpolation weights,
    fold in the per-point attention weights and run one bf16 MXU matmul per level.
    (Replaces the scalarized advanced-indexing gather; zero-padding semantics preserved
    because out-of-range tap indices match no one-hot column.)"""
    N, Lin, H, Dh = value.shape
    _, Lq, _, L, P, _ = sampling_locations.shape
    out = None
    start = 0
    for lvl, (Hl, Wl) in enumerate(spatial_shapes):
        v = value[:, start:start + Hl * Wl]                          # (N, S, H, Dh)
        start += Hl * Wl
        v = v.transpose(0, 2, 1, 3).reshape(N * H, Hl * Wl, Dh)      # (BH, S, Dh) bf16
        loc = sampling_locations[:, :, :, lvl]                       # (N, Lq, H, P, 2) in [0,1]
        loc = loc.transpose(0, 2, 1, 3, 4).reshape(N * H, Lq, P, 2)
        # grid_sample(align_corners=False): pixel = loc * size - 0.5
        xs = loc[..., 0] * Wl - 0.5
        ys = loc[..., 1] * Hl - 0.5
        x0 = jnp.floor(xs); y0 = jnp.floor(ys)
        ix = jnp.arange(Wl, dtype=jnp.float32)
        iy = jnp.arange(Hl, dtype=jnp.float32)
        wx = ((ix == x0[..., None]).astype(jnp.float32) * (x0 + 1.0 - xs)[..., None]
              + (ix == (x0 + 1.0)[..., None]).astype(jnp.float32) * (xs - x0)[..., None])  # (BH,Lq,P,Wl)
        wy = ((iy == y0[..., None]).astype(jnp.float32) * (y0 + 1.0 - ys)[..., None]
              + (iy == (y0 + 1.0)[..., None]).astype(jnp.float32) * (ys - y0)[..., None])  # (BH,Lq,P,Hl)
        aw = attention_weights[:, :, :, lvl]                          # (N, Lq, H, P)
        aw = aw.transpose(0, 2, 1, 3).reshape(N * H, Lq, P)
        dense = jnp.einsum("bqph,bqpw,bqp->bqhw", wy, wx, aw)         # (BH, Lq, Hl, Wl), f32
        dense = dense.reshape(N * H, Lq, Hl * Wl)
        lvl_out = jnp.einsum("bqs,bsd->bqd", dense.astype(jnp.bfloat16), v,
                             preferred_element_type=jnp.float32)      # (BH, Lq, Dh) f32
        out = lvl_out if out is None else out + lvl_out
    out = out.reshape(N, H, Lq, Dh).transpose(0, 2, 1, 3).reshape(N, Lq, H * Dh)
    return out


def ms_deform_attn(p, query, reference_points, input_flatten, spatial_shapes,
                   padding_mask, residual, norm_g, norm_b,
                   n_heads=8, n_levels=4, n_points=4):
    """MSDeformAttn followed by (residual + dropout-id + LayerNorm), with the final
    output_proj + residual + LN fused into one Pallas kernel."""
    N, Lq, d = query.shape
    value = linear_pallas(input_flatten, p["value_proj"]["w"], p["value_proj"]["b"],
                          out_dtype=jnp.bfloat16)
    if padding_mask is not None:
        value = jnp.where(padding_mask[..., None], 0.0, value).astype(jnp.bfloat16)
    Dh = d // n_heads
    value = value.reshape(N, -1, n_heads, Dh)

    # sampling_offsets + attention_weights projections fused into one matmul (N = 256 + 128)
    n_off = n_heads * n_levels * n_points * 2
    ow = linear_pallas(query, p["offsets_attn"]["w"], p["offsets_attn"]["b"])
    so = ow[..., :n_off].reshape(N, Lq, n_heads, n_levels, n_points, 2)
    aw = jax.nn.softmax(ow[..., n_off:].reshape(N, Lq, n_heads, n_levels * n_points), axis=-1)
    aw = aw.reshape(N, Lq, n_heads, n_levels, n_points)

    ss = jnp.asarray(spatial_shapes, dtype=jnp.float32)               # (L, 2) as (H, W)
    offset_normalizer = jnp.stack([ss[:, 1], ss[:, 0]], -1)           # (L, 2) as (W, H)
    sampling_locations = (reference_points[:, :, None, :, None, :]
                          + so / offset_normalizer[None, None, None, :, None, :])
    out = _ms_deform_attn_core(value, spatial_shapes, sampling_locations, aw)
    return linear_ln_pallas(out, p["output_proj"]["w"], p["output_proj"]["b"],
                            residual, norm_g, norm_b)


# ----------------------------------------------------------------------------- transformer layers
def _ffn(p, x):
    h = linear_pallas(x, p["linear1"]["w"], p["linear1"]["b"], activation="relu",
                      out_dtype=jnp.bfloat16)
    # linear2 + residual + LayerNorm fused
    return linear_ln_pallas(h, p["linear2"]["w"], p["linear2"]["b"],
                            x, p["norm2"]["g"], p["norm2"]["b"])


def encoder_layer_fwd(p, src, pos, reference_points, spatial_shapes, padding_mask):
    q = src + pos
    src = ms_deform_attn(p["self_attn"], q, reference_points, src, spatial_shapes,
                         padding_mask, src, p["norm1"]["g"], p["norm1"]["b"])
    return _ffn(p, src)


def decoder_layer_fwd(p, tgt, query_pos, reference_points, src, spatial_shapes, padding_mask):
    q = tgt + query_pos
    tgt = ms_deform_attn(p["cross_attn"], q, reference_points, src, spatial_shapes,
                         padding_mask, tgt, p["norm1"]["g"], p["norm1"]["b"])
    return _ffn(p, tgt)


def get_valid_ratio(mask):
    _, H, W = mask.shape
    valid_H = jnp.sum(jnp.logical_not(mask[:, :, 0]).astype(jnp.float32), 1)
    valid_W = jnp.sum(jnp.logical_not(mask[:, 0, :]).astype(jnp.float32), 1)
    return jnp.stack([valid_W / W, valid_H / H], -1)


def get_encoder_reference_points(spatial_shapes, valid_ratios):
    refs = []
    for lvl, (Hl, Wl) in enumerate(spatial_shapes):
        ref_y, ref_x = jnp.meshgrid(jnp.linspace(0.5, Hl - 0.5, Hl),
                                    jnp.linspace(0.5, Wl - 0.5, Wl), indexing="ij")
        ref_y = ref_y.reshape(-1)[None] / (valid_ratios[:, None, lvl, 1] * Hl)
        ref_x = ref_x.reshape(-1)[None] / (valid_ratios[:, None, lvl, 0] * Wl)
        refs.append(jnp.stack([ref_x, ref_y], -1))
    reference_points = jnp.concatenate(refs, 1)                        # (N, Len, 2)
    return reference_points[:, :, None] * valid_ratios[:, None]        # (N, Len, L, 2)


def get_decoder_reference_points(H, W):
    ref_y, ref_x = jnp.meshgrid(jnp.linspace(0.5, H - 0.5, H),
                                jnp.linspace(0.5, W - 0.5, W), indexing="ij")
    ref_y = ref_y.reshape(-1)[None] / H
    ref_x = ref_x.reshape(-1)[None] / W
    return jnp.stack([ref_x, ref_y], -1)                                # (1, L, 2)


def generate_corner_preds(tp, outputs, conv_outputs_nhwc):
    B, L, C = outputs.shape
    side = int(math.isqrt(L))
    x = outputs.reshape(B, side, side, C)                               # already NHWC
    x = jnp.concatenate([x, conv_outputs_nhwc["layer1"]], axis=-1)
    x = conv2d_nhwc(x, tp["conv_up1"]["w"], tp["conv_up1"]["b"], 3, stride=1, padding=1,
                    relu=True, out_dtype=jnp.bfloat16)
    x = upsample2x_bilinear_align_corners_nhwc(x)
    x = jnp.concatenate([x.astype(jnp.float32), conv_outputs_nhwc["layer0"]], axis=-1)
    x = conv2d_nhwc(x, tp["conv_up0"]["w"], tp["conv_up0"]["b"], 3, stride=1, padding=1,
                    relu=True, out_dtype=jnp.bfloat16)
    x = upsample2x_bilinear_align_corners_nhwc(x)
    x = jnp.concatenate([x.astype(jnp.float32), conv_outputs_nhwc["x_original"]], axis=-1)
    x = conv2d_nhwc(x, tp["conv_orig2"]["w"], tp["conv_orig2"]["b"], 3, stride=1, padding=1,
                    relu=True, out_dtype=jnp.float32)
    # 256 -> 1 projection kept in plain JAX: a lane-width-1 Pallas output wastes 127/128 lanes.
    preds = jnp.einsum("bhwc,cn->bhwn", x, tp["output_fc_1"]["w"]) + tp["output_fc_1"]["b"]
    return jax.nn.sigmoid(preds[..., 0])                                # (B, H, W)


def corner_transformer_forward(tp, srcs, masks, pos_flats, query_embed, reference_points,
                               all_image_feats_nhwc):
    src_flat, mask_flat, pos_flat, spatial_shapes = [], [], [], []
    for lvl, (src, mask, pos) in enumerate(zip(srcs, masks, pos_flats)):
        B, H, W, C = src.shape                                          # NHWC
        spatial_shapes.append((H, W))
        src_flat.append(src.reshape(B, H * W, C))
        mask_flat.append(mask.reshape(B, H * W))
        pos_flat.append(pos + tp["level_embed"][lvl][None, None, :])
    src_flat = jnp.concatenate(src_flat, 1)
    mask_flat = jnp.concatenate(mask_flat, 1)
    pos_flat = jnp.concatenate(pos_flat, 1)
    valid_ratios = jnp.stack([get_valid_ratio(m) for m in masks], 1)    # (B, L, 2)

    # encoder (num_encoder_layers = 1)
    enc_ref = get_encoder_reference_points(spatial_shapes, valid_ratios)
    memory = encoder_layer_fwd(tp["encoder_layer"], src_flat, pos_flat, enc_ref,
                               spatial_shapes, mask_flat)

    # per-edge decoder (1 cross-attn-only layer)
    tgt = query_embed
    dec_ref = reference_points[:, :, None] * valid_ratios[:, None]      # (B, Lq, L, 2)
    hs = decoder_layer_fwd(tp["decoder_layer"], tgt, query_embed, dec_ref, memory,
                           spatial_shapes, mask_flat)
    return generate_corner_preds(tp, hs, all_image_feats_nhwc)


# ----------------------------------------------------------------------------- HeatCorner forward
def heat_corner_forward(params, image_feats, feat_mask, pixels_feat, pixels, all_image_feats, cfg):
    del pixels  # unused by the reference forward
    hidden = cfg["hidden_dim"]
    names = sorted(image_feats.keys())
    # PyTorch-compat boundary: convert NCHW inputs to NHWC exactly once.
    feats_nhwc = {n: jnp.transpose(image_feats[n], (0, 2, 3, 1)) for n in names}
    all_feats_nhwc = {k: jnp.transpose(v, (0, 2, 3, 1)) for k, v in all_image_feats.items()}

    srcs, masks, all_pos = [], [], []
    for l, name in enumerate(names):
        x = feats_nhwc[name]
        B, H, W, C = x.shape
        ip = params["input_proj"][l]
        src = conv2d_nhwc(x, ip["conv"]["w"], ip["conv"]["b"], 1, stride=1, padding=0)
        src = group_norm_nhwc(src, ip["gn"]["g"], ip["gn"]["b"])
        srcs.append(src)
        masks.append(nearest_resize_mask(feat_mask, H, W))
        all_pos.append(pos_embed_sine_flat(B, H, W, hidden // 2))
    if cfg["num_feature_levels"] > len(srcs):
        _len = len(srcs)
        for l in range(_len, cfg["num_feature_levels"]):
            ip = params["input_proj"][l]
            inp = feats_nhwc[names[-1]] if l == _len else srcs[-1]
            src = conv2d_nhwc(inp, ip["conv"]["w"], ip["conv"]["b"], 3, stride=2, padding=1)
            src = group_norm_nhwc(src, ip["gn"]["g"], ip["gn"]["b"])
            B, H, W, _ = src.shape
            srcs.append(src)
            masks.append(nearest_resize_mask(feat_mask, H, W))
            all_pos.append(pos_embed_sine_flat(B, H, W, hidden // 2))

    # to_patch_embedding: Rearrange + Linear + Linear
    pe = params["to_patch_embedding"]
    B, Hp, Wp, Cin = pixels_feat.shape
    ps = 4
    x = pixels_feat.reshape(B, Hp // ps, ps, Wp // ps, ps, Cin)
    x = x.transpose(0, 1, 3, 2, 4, 5).reshape(B, (Hp // ps) * (Wp // ps), ps * ps * Cin)
    x = linear_pallas(x, pe["l1"]["w"], pe["l1"]["b"], out_dtype=jnp.bfloat16)
    sp_inputs = linear_pallas(x, pe["l2"]["w"], pe["l2"]["b"])

    H_tgt = int(math.isqrt(sp_inputs.shape[1]))
    reference_points_s1 = get_decoder_reference_points(H_tgt, H_tgt)
    return corner_transformer_forward(params["transformer"], srcs, masks, all_pos,
                                      sp_inputs, reference_points_s1, all_feats_nhwc)


# ----------------------------------------------------------------------------- parameter init
def _sampling_offsets_bias(n_heads, n_levels, n_points):
    thetas = np.arange(n_heads, dtype=np.float32) * (2.0 * math.pi / n_heads)
    grid = np.stack([np.cos(thetas), np.sin(thetas)], -1)
    grid = grid / np.abs(grid).max(-1, keepdims=True)
    grid = np.tile(grid[:, None, None, :], (1, n_levels, n_points, 1))
    for i in range(n_points):
        grid[:, :, i, :] *= (i + 1)
    return jnp.asarray(grid.reshape(-1), dtype=jnp.float32)


def init_params(key, cfg):
    hidden, input_dim = cfg["hidden_dim"], cfg["input_dim"]
    chans, n_levels = cfg["backbone_num_channels"], cfg["num_feature_levels"]
    keys = iter(jax.random.split(key, 128))

    def xavier(shape, fan_in, fan_out):
        limit = math.sqrt(6.0 / (fan_in + fan_out))
        return jax.random.uniform(next(keys), shape, jnp.float32, -limit, limit)

    def linear(kin, kout, dtype=jnp.bfloat16):
        # matmul weights pre-cast once at init (no per-call cast pass)
        return {"w": xavier((kin, kout), kin, kout).astype(dtype),
                "b": jnp.zeros((kout,), jnp.float32)}

    def conv(cout, cin, k):
        # Stored pre-flattened for NHWC im2col: (kh*kw*cin, cout), bf16.
        return {"w": xavier((k * k * cin, cout), cin * k * k, cout * k * k).astype(jnp.bfloat16),
                "b": jnp.zeros((cout,), jnp.float32)}

    def norm(c):
        return {"g": jnp.ones((c,), jnp.float32), "b": jnp.zeros((c,), jnp.float32)}

    def msdeform(d, H=8, L=4, P=4):
        # sampling_offsets (zeros weight, special bias) and attention_weights (zeros)
        # fused along N into a single 256 -> 384 projection.
        so_w = jnp.zeros((d, H * L * P * 2), jnp.bfloat16)
        aw_w = jnp.zeros((d, H * L * P), jnp.bfloat16)
        so_b = _sampling_offsets_bias(H, L, P)
        aw_b = jnp.zeros((H * L * P,), jnp.float32)
        return {"offsets_attn": {"w": jnp.concatenate([so_w, aw_w], axis=1),
                                 "b": jnp.concatenate([so_b, aw_b], axis=0)},
                "value_proj": linear(d, d), "output_proj": linear(d, d)}

    params = {}
    ip = []
    for c in chans:
        ip.append({"conv": conv(hidden, c, 1), "gn": norm(hidden)})
    in_c = chans[-1]
    for _ in range(n_levels - len(chans)):
        ip.append({"conv": conv(hidden, in_c, 3), "gn": norm(hidden)})
        in_c = hidden
    params["input_proj"] = ip

    patch_dim = 4 * 4 * input_dim
    params["to_patch_embedding"] = {"l1": linear(patch_dim, input_dim),
                                    "l2": linear(input_dim, hidden)}

    d_ffn = 1024
    params["transformer"] = {
        "level_embed": jax.random.normal(next(keys), (4, hidden), jnp.float32),
        "encoder_layer": {"self_attn": msdeform(hidden), "norm1": norm(hidden),
                          "linear1": linear(hidden, d_ffn), "linear2": linear(d_ffn, hidden),
                          "norm2": norm(hidden)},
        "decoder_layer": {"cross_attn": msdeform(hidden), "norm1": norm(hidden),
                          "linear1": linear(hidden, d_ffn), "linear2": linear(d_ffn, hidden),
                          "norm2": norm(hidden)},
        "conv_up1": conv(256, hidden + 256, 3),      # convrelu(256+256, 256, 3, 1)
        "conv_up0": conv(128, 64 + 256, 3),          # convrelu(64+256, 128, 3, 1)
        "conv_orig2": conv(hidden, 64 + 128, 3),     # convrelu(64+128, d_model, 3, 1)
        "output_fc_1": linear(hidden, 1, dtype=jnp.float32),   # kept f32 (plain-JAX einsum)
    }
    return params


# ----------------------------------------------------------------------------- demo
if __name__ == "__main__":
    cfg = dict(input_dim=128, hidden_dim=256, num_feature_levels=4,
               backbone_strides=[8, 16], backbone_num_channels=[64, 128])

    key = jax.random.PRNGKey(0)
    pkey, dkey = jax.random.split(key)
    params = init_params(pkey, cfg)
    dkeys = jax.random.split(dkey, 8)

    B = 2
    image_feats = {
        "0": jax.random.normal(dkeys[0], (B, 64, 16, 16), jnp.float32),
        "1": jax.random.normal(dkeys[1], (B, 128, 8, 8), jnp.float32),
    }
    feat_mask = jnp.zeros((B, 64, 64), dtype=bool)
    pixels_feat = jax.random.normal(dkeys[2], (B, 16, 16, 128), jnp.float32)
    pixels = None  # unused by forward
    all_image_feats = {
        "layer1": jax.random.normal(dkeys[3], (B, 256, 4, 4), jnp.float32),
        "layer0": jax.random.normal(dkeys[4], (B, 64, 8, 8), jnp.float32),
        "x_original": jax.random.normal(dkeys[5], (B, 64, 16, 16), jnp.float32),
    }

    preds = heat_corner_forward(params, image_feats, feat_mask, pixels_feat, pixels,
                                all_image_feats, cfg)
    preds = jax.block_until_ready(preds)
    assert preds.shape == (B, 16, 16), preds.shape
    assert bool(jnp.all(jnp.isfinite(preds)))
    print("KERNEL_OK")
</pallas_src>

<mosaic_0001>
module attributes {stable_mosaic.version = 11 : i64} {
  func.func @_matmul_kernel(%arg0: i32, %arg1: i32, %arg2: i32, %arg3: memref<256x64xbf16, #tpu.memory_space<vmem>>, %arg4: memref<64x256xbf16, #tpu.memory_space<vmem>>, %arg5: memref<1x256xf32, #tpu.memory_space<vmem>>, %arg6: memref<256x256xf32, #tpu.memory_space<vmem>>, %arg7: memref<256x256xf32, #tpu.memory_space<vmem>>) attributes {dimension_semantics = [#tpu.dimension_semantics<parallel>, #tpu.dimension_semantics<parallel>, #tpu.dimension_semantics<arbitrary>], iteration_bounds = array<i64: 2, 1, 1>, scalar_prefetch = 0 : i64, scratch_operands = 1 : i64, tpu.core_type = #tpu.core_type<tc>, window_params = [{transform_indices = @transform_0, window_bounds = array<i64: 256, 64>}, {transform_indices = @transform_1, window_bounds = array<i64: 64, 256>}, {transform_indices = @transform_2, window_bounds = array<i64: 1, 256>}, {transform_indices = @transform_3, window_bounds = array<i64: 256, 256>}]} {
    %c0_i32 = arith.constant 0 : i32
    %0 = arith.cmpi eq, %arg2, %c0_i32 : i32
    %1 = arith.extui %0 : i1 to i32
    %c0_i32_0 = arith.constant 0 : i32
    %2 = arith.cmpi ne, %1, %c0_i32_0 : i32
    scf.if %2 {
      %cst_10 = arith.constant 0.000000e+00 : f32
      %12 = vector.broadcast %cst_10 : f32 to vector<256x256xf32>
      %c0_11 = arith.constant 0 : index
      %c0_12 = arith.constant 0 : index
      %13 = vector.load %arg7[%c0_11, %c0_12] : memref<256x256xf32, #tpu.memory_space<vmem>>, vector<256x256xf32>
      tpu.vector_store %arg7[%c0_11, %c0_12], %12 {strides = array<i32>} : memref<256x256xf32, #tpu.memory_space<vmem>>, vector<256x256xf32>,
    } else {
    }
    %c0 = arith.constant 0 : index
    %c0_1 = arith.constant 0 : index
    %3 = vector.load %arg7[%c0, %c0_1] : memref<256x256xf32, #tpu.memory_space<vmem>>, vector<256x256xf32>
    %c0_2 = arith.constant 0 : index
    %c0_3 = arith.constant 0 : index
    %4 = vector.load %arg3[%c0_2, %c0_3] : memref<256x64xbf16, #tpu.memory_space<vmem>>, vector<256x64xbf16>
    %c0_4 = arith.constant 0 : index
    %c0_5 = arith.constant 0 : index
    %5 = vector.load %arg4[%c0_4, %c0_5] : memref<64x256xbf16, #tpu.memory_space<vmem>>, vector<64x256xbf16>
    %cst = arith.constant dense<0.000000e+00> : vector<256x256xf32>
    %6 = tpu.matmul %4, %5, %cst {dimension_numbers = #tpu.dot_dimension_numbers<[1], [0], [0], [1], [0, 0, 1, 1], [], []>} : vector<256x64xbf16>, vector<64x256xbf16>, vector<256x256xf32> -> vector<256x256xf32>
    %7 = arith.addf %3, %6 : vector<256x256xf32>
    %c0_6 = arith.constant 0 : index
    %c0_7 = arith.constant 0 : index
    %8 = vector.load %arg7[%c0_6, %c0_7] : memref<256x256xf32, #tpu.memory_space<vmem>>, vector<256x256xf32>
    tpu.vector_store %arg7[%c0_6, %c0_7], %7 {strides = array<i32>} : memref<256x256xf32, #tpu.memory_space<vmem>>, vector<256x256xf32>,
    %c0_i32_8 = arith.constant 0 : i32
    %9 = arith.cmpi eq, %arg2, %c0_i32_8 : i32
    %10 = arith.extui %9 : i1 to i32
    %c0_i32_9 = arith.constant 0 : i32
    %11 = arith.cmpi ne, %10, %c0_i32_9 : i32
    scf.if %11 {
      %c0_10 = arith.constant 0 : index
      %c0_11 = arith.constant 0 : index
      %12 = vector.load %arg7[%c0_10, %c0_11] : memref<256x256xf32, #tpu.memory_space<vmem>>, vector<256x256xf32>
      %c0_12 = arith.constant 0 : index
      %c0_13 = arith.constant 0 : index
      %13 = vector.load %arg5[%c0_12, %c0_13] : memref<1x256xf32, #tpu.memory_space<vmem>>, vector<1x256xf32>
      %14 = vector.broadcast %13 : vector<1x256xf32> to vector<256x256xf32>
      %15 = arith.addf %12, %14 : vector<256x256xf32>
      %c0_14 = arith.constant 0 : index
      %c0_15 = arith.constant 0 : index
      %16 = vector.load %arg6[%c0_14, %c0_15] : memref<256x256xf32, #tpu.memory_space<vmem>>, vector<256x256xf32>
      tpu.vector_store %arg6[%c0_14, %c0_15], %15 {strides = array<i32>} : memref<256x256xf32, #tpu.memory_space<vmem>>, vector<256x256xf32>,
    } else {
    }
    return
  }
  func.func @transform_0(%arg0: i32, %arg1: i32, %arg2: i32) -> (i32, i32) {
    %c0_i32 = arith.constant 0 : i32
    return %arg0, %arg2 : i32, i32
  }
  func.func @transform_1(%arg0: i32, %arg1: i32, %arg2: i32) -> (i32, i32) {
    %c0_i32 = arith.constant 0 : i32
    return %arg2, %arg1 : i32, i32
  }
  func.func @transform_2(%arg0: i32, %arg1: i32, %arg2: i32) -> (i32, i32) {
    %c0_i32 = arith.constant 0 : i32
    %c0_i32_0 = arith.constant 0 : i32
    return %c0_i32, %arg1 : i32, i32
  }
  func.func @transform_3(%arg0: i32, %arg1: i32, %arg2: i32) -> (i32, i32) {
    %c0_i32 = arith.constant 0 : i32
    return %arg0, %arg1 : i32, i32
  }
}

</mosaic_0001>

<bundles_post_ra>
// kernel: tpu_custom_call.1
= control target key start
LH: loop header
LB: loop body
LE: loop exit
PB: predicated region body
PF: predicated region fallthrough
CT: control target
= control target key end

     0   :  { %8 = vsyncpa [#allocation4], 0  ;;  %s1847_s0 = inlined_call_operand.vmem [shape: bf16[512,64], index: 0, kind: input, shape index: {}]   ;;  %s1848_s1 = inlined_call_operand.vmem [shape: bf16[64,256], index: 1, kind: input, shape index: {}]   ;;  %s1849_s2 = inlined_call_operand.vmem [shape: f32[1,256], index: 2, kind: input, shape index: {}]   ;;  %s1850_s3 = inlined_call_operand.hbm [shape: f32[512,256], index: 3, kind: output, shape index: {}]  }
   0x1   :  { %10 = vsyncpa [#allocation4 + $0x1], 0  ;;  %s1518_s12 = smov 0   ;;  %s1520_s13 = smov 0  }
   0x2   :  { %s1522_s14 = smov 0   ;;  %s1524_s15 = smov 0  }
   0x3   :  { %s1526_s16 = smov 0   ;;  %s1528_s17 = smov 0  }
   0x4 LB: > { %s1264_s18 = sadd.s32 4294967295, %s1492_s17   ;;  %s1265_s19 = sadd.s32 4294967294, %s1492_s17   ;;  %s1492_s17 = sphi %s1528_s17, %s16_s17   ;;  %s1488_s16 = sphi %s1526_s16, %s1857_s16   ;;  %s1484_s15 = sphi %s1524_s15, %s1856_s15   ;;  %s1480_s14 = sphi %s1522_s14, %s1855_s14   ;;  %s1476_s13 = sphi %s1520_s13, %s1854_s13   ;;  %s1472_s12 = sphi %s1518_s12, %s1853_s12  }
   0x5   : > { %s35_s20 = sadd.s32 1, %s1488_s16  ;;  %s126_s21 = sadd.s32 1, %s1480_s14 }
   0x6   : > { %p37_p0 = scmp.ge.s32.totalorder %s35_s20, 2  ;;  %p136_p1 = scmp.ne.s32.totalorder %s1480_s14, %s1476_s13 }
   0x7   : > { %p137_p2 = scmp.eq.s32.totalorder %s1264_s18, 1  ;;  %p142_p3 = scmp.ne.s32.totalorder %s1476_s13, %s1472_s12 }
   0x8   : > { %s1859_s20 = smov (%p37_p0, %s35_s20), 0  ;;  %p143_p5 = scmp.eq.s32.totalorder %s1265_s19, 1 }
   0x9   : > { %p1558_p4 = por %p137_p2, %p136_p1  ;;  %s121_s23 = ssub.s32 %s1488_s16, %s1859_s20 }
   0xa   : > { %p1270_p6 = scmp.ge.s32.totalorder %s1492_s17, 1  ;;  %p124_p7 = scmp.eq.s32.totalorder %s121_s23, 0 }
   0xb   : > { %p1565_p8 = por %p143_p5, %p142_p3  ;;  %p196_p9 = scmp.lt.s32.totalorder %s1492_s17, 3 }
   0xc   : > { %s1571_s25 = scalar_select %p124_p7, %s1480_s14, %s126_s21  }
   0xd   : > { %p197_p10 = pnand %p1270_p6, %p196_p9 }
   0xe   : > { %s1272_s28 = sshll.u32 (!%p197_p10), %s1484_s15, 5  ;;  %s234_s30 = sand.u32 (!%p197_p10), 1, %s1476_s13  }
   0xf   : > { %200 = sbr.rel (%p197_p10) target bundleno = 309 (0x135), region = 32  ;;  %p238_p11 = scmp.lt.s32.totalorder (!%p197_p10), %s1272_s28, 63 }
  0x10   : > { %s1271_s6 = sshll.u32 (!%p197_p10), %s234_s30, 9  ;;  %s1321_s8 = sshll.u32 (!%p197_p10), %s1484_s15, 13 }
  0x11   : > { %s1663_s7 = scalar_lea.vmem (!%p197_p10), [#allocation3], %s1271_s6  ;;  %s1790_s18 = scalar_lea.hbm (!%p197_p10), %s1850_s3, %s1321_s8 }
  0x12   : > { %s1152_s9 = sshll.u32 (!%p197_p10), %s1663_s7, 4  ;;  %s1802_s15 = scalar_lea.sflag (!%p197_p10), [#allocation4], %s234_s30  ;;  %s1792_s9 = int_to_ptr.vmem [resolvable:$true] %s1152_s9 }
  0x13   : > { %s1495_s21 = smov (!%p197_p10), [#allocation3]  }
  0x14   : > { %v1388_v0 = vld [vmem:[%s1848_s1 + $0x34] ss:$8 sps:$4 sm:$0xff]   ;;  %v1390_v1 = vld [vmem:[%s1848_s1 + $0x30] ss:$8 sps:$4 sm:$0xff]   ;;  %v1494_v2 = vmov 0   ;;  %s1861_s28 = smov (!%p238_p11, %s1272_s28), 63  ;;  %v997_v25 = vlaneseq }
  0x15   : > { %639 = vmatprep.mubr.bf16.mxu0 %v1494_v2  ;;  %719 = vmatprep.mubr.bf16.mxu1 %v1494_v2  ;;  %v1391_v3 = vld [vmem:[%s1848_s1 + $0x24] ss:$8 sps:$4 sm:$0xff]   ;;  %v1393_v4 = vld [vmem:[%s1848_s1 + $0x20] ss:$8 sps:$4 sm:$0xff]   ;;  %v1394_v5 = vld [vmem:[%s1848_s1 + $0x14] ss:$8 sps:$4 sm:$0xff]  }
  0x16   : > { %615 = vmatprep.subr.bf16.mxu0 %v1388_v0  ;;  %1322 = vmatprep.subr.bf16.mxu1 %v1388_v0  ;;  %s1273_s10 = sshll.u32 %s1861_s28, 2  ;;  %v1396_v6 = vld [vmem:[%s1848_s1 + $0x10] ss:$8 sps:$4 sm:$0xff]   ;;  %v1397_v7 = vld [vmem:[%s1848_s1 + $0x4] ss:$8 sps:$4 sm:$0xff]   ;;  %vm558_vm0 = vcmask 523264  }
  0x17   : > { %616 = vmatpush1.bf16.msra.mxu0 %v1390_v1  ;;  %1326 = vmatpush1.bf16.msra.mxu1 %v1390_v1  ;;  %s1594_s19 = scalar_lea.vmem %s1847_s0, %s1273_s10  ;;  %v1399_v8 = vld [vmem:[%s1848_s1] ss:$8 sps:$4 sm:$0xff]   ;;  %v998_v26 = vshrl.u32 %v997_v25, 7  ;;  %s1420_s23 = sshll.u32 %s1495_s21, 4  ;;  %s1421_s23 = int_to_ptr.vmem [resolvable:$false] %s1420_s23 }
  0x18   : > { %617 = vmatprep.subr.bf16.mxu0 %v1391_v3  ;;  %1323 = vmatprep.subr.bf16.mxu1 %v1391_v3  ;;  %v1400_v9 = vld [vmem:[%s1594_s19] sm:$0xff]   ;;  %v1402_v11 = vld [vmem:[%s1594_s19 + $0x8] sm:$0xff]   ;;  %v1404_v13 = vld [vmem:[%s1594_s19 + $0x10] sm:$0xff]   ;;  %s1422_s26 = scalar_lea.vmem %s1421_s23, 16384  ;;  %p1423_p1 = scmp.lt.s32.totalorder %s1792_s9, %s1421_s23 }
  0x19   : > { %v1401_v10 = vld [vmem:[%s1594_s19 + $0x40] sm:$0xff]   ;;  %v1403_v12 = vld [vmem:[%s1594_s19 + $0x48] sm:$0xff]   ;;  %v1405_v14 = vld [vmem:[%s1594_s19 + $0x50] sm:$0xff]   ;;  %v999_v27 = vsub.s32 0, %v998_v26  ;;  %v1003_v29 = vsub.s32 1, %v998_v26 }
  0x1a   : > { %v1406_v15 = vld [vmem:[%s1594_s19 + $0x18] sm:$0xff]   ;;  %v1408_v17 = vld [vmem:[%s1594_s19 + $0x20] sm:$0xff]   ;;  %v1410_v19 = vld [vmem:[%s1594_s19 + $0x28] sm:$0xff]  }
  0x1b   : > { %618 = vmatpush1.bf16.msra.mxu0 %v1393_v4  ;;  %1327 = vmatpush1.bf16.msra.mxu1 %v1393_v4  ;;  %v1407_v16 = vld [vmem:[%s1594_s19 + $0x58] sm:$0xff]   ;;  %v1409_v18 = vld [vmem:[%s1594_s19 + $0x60] sm:$0xff]   ;;  %v1411_v20 = vld [vmem:[%s1594_s19 + $0x68] sm:$0xff]  }
  0x1c   : > { %619 = vmatprep.subr.bf16.mxu0 %v1394_v5  ;;  %1324 = vmatprep.subr.bf16.mxu1 %v1394_v5  ;;  %v1412_v21 = vld [vmem:[%s1594_s19 + $0x30] sm:$0xff]   ;;  %v1414_v23 = vld [vmem:[%s1594_s19 + $0x38] sm:$0xff]   ;;  %v995_v28 = vld [vmem:[%s1849_s2] sm:$0x3] }
  0x1d   : > { %v1413_v22 = vld [vmem:[%s1594_s19 + $0x70] sm:$0xff]   ;;  %v1415_v24 = vld [vmem:[%s1594_s19 + $0x78] sm:$0xff]   ;;  %v1657_v30 = vrot.slane %v995_v28, %v999_v27  ;;  %v1659_v31 = vrot.slane %v995_v28, %v1003_v29  ;;  %s1416_s19 = scalar_lea.vmem %s1792_s9, 8192 }
  0x1e   : > { %p1417_p12 = scmp.ne.s32.totalorder %s1792_s9, %s1416_s19  ;;  %p1424_p2 = scmp.lt.s32.totalorder %s1422_s26, %s1416_s19 }
  0x1f   : > { %620 = vmatpush1.bf16.msra.mxu0 %v1396_v6  ;;  %1328 = vmatpush1.bf16.msra.mxu1 %v1396_v6 }
  0x20   : > { %621 = vmatprep.subr.bf16.mxu0 %v1397_v7  ;;  %1325 = vmatprep.subr.bf16.mxu1 %v1397_v7  ;;  %p1418_p13 = pnand %p1417_p12, %p1558_p4  ;;  %p1425_p3 = por %p1424_p2, %p1423_p1 }
  0x22   : > { %p1419_p0 = pneg %p1418_p13 }
  0x23   : > { %622 = vmatpush1.bf16.msra.mxu0 %v1399_v8  ;;  %1329 = vmatpush1.bf16.msra.mxu1 %v1399_v8 }
  0x24   : > { %p1426_p5 = pnand %p1425_p3, %p1419_p0 }
  0x26   : > { %1298 = vmatmul.mubr.msk.bf16.vlgmr.msra.gmra.mxu0 %vm558_vm0, %v1400_v9  ;;  %1306 = vmatmul.mubr.msk.bf16.vlgmr.msra.gmra.mxu1 %vm558_vm0, %v1401_v10 }
  0x27   : > { %649 = vmatprep.mubr.bf16.mxu0 %v1494_v2  ;;  %729 = vmatprep.mubr.bf16.mxu1 %v1494_v2 }
  0x2e   : > { %1299 = vmatmul.mubr.msk.bf16.gmra.mxu0 %vm558_vm0, %v1402_v11  ;;  %1307 = vmatmul.mubr.msk.bf16.gmra.mxu1 %vm558_vm0, %v1403_v12 }
  0x2f   : > { %659 = vmatprep.mubr.bf16.mxu0 %v1494_v2  ;;  %739 = vmatprep.mubr.bf16.mxu1 %v1494_v2 }
  0x36   : > { %1300 = vmatmul.mubr.msk.bf16.gmra.mxu0 %vm558_vm0, %v1404_v13  ;;  %1308 = vmatmul.mubr.msk.bf16.gmra.mxu1 %vm558_vm0, %v1405_v14 }
  0x37   : > { %669 = vmatprep.mubr.bf16.mxu0 %v1494_v2  ;;  %749 = vmatprep.mubr.bf16.mxu1 %v1494_v2 }
  0x3e   : > { %1301 = vmatmul.mubr.msk.bf16.gmra.mxu0 %vm558_vm0, %v1406_v15  ;;  %1309 = vmatmul.mubr.msk.bf16.gmra.mxu1 %vm558_vm0, %v1407_v16 }
  0x3f   : > { %679 = vmatprep.mubr.bf16.mxu0 %v1494_v2  ;;  %759 = vmatprep.mubr.bf16.mxu1 %v1494_v2 }
  0x46   : > { %1302 = vmatmul.mubr.msk.bf16.gmra.mxu0 %vm558_vm0, %v1408_v17  ;;  %1310 = vmatmul.mubr.msk.bf16.gmra.mxu1 %vm558_vm0, %v1409_v18 }
  0x47   : > { %689 = vmatprep.mubr.bf16.mxu0 %v1494_v2  ;;  %769 = vmatprep.mubr.bf16.mxu1 %v1494_v2 }
  0x4e   : > { %1303 = vmatmul.mubr.msk.bf16.gmra.mxu0 %vm558_vm0, %v1410_v19  ;;  %1311 = vmatmul.mubr.msk.bf16.gmra.mxu1 %vm558_vm0, %v1411_v20 }
  0x4f   : > { %699 = vmatprep.mubr.bf16.mxu0 %v1494_v2  ;;  %779 = vmatprep.mubr.bf16.mxu1 %v1494_v2 }
  0x56   : > { %1304 = vmatmul.mubr.msk.bf16.gmra.mxu0 %vm558_vm0, %v1412_v21  ;;  %1312 = vmatmul.mubr.msk.bf16.gmra.mxu1 %vm558_vm0, %v1413_v22 }
  0x57   : > { %709 = vmatprep.mubr.bf16.mxu0 %v1494_v2  ;;  %789 = vmatprep.mubr.bf16.mxu1 %v1494_v2 }
  0x5e   : > { %1305 = vmatmul.mubr.msk.bf16.gmra.mxu0 %vm558_vm0, %v1414_v23  ;;  %1313 = vmatmul.mubr.msk.bf16.gmra.mxu1 %vm558_vm0, %v1415_v24 }
  0xe6   : > { %v641_v32 = vpop.f32.mrf.mxu0  ;;  %v721_v33 = vpop.f32.mrf.mxu1 }
  0xe7   : > { %v1007_v34 = vadd.f32 %v1657_v30, %v641_v32  ;;  %v1039_v35 = vadd.f32 %v1657_v30, %v721_v33 }
  0xe8   : > { %v643_v36 = vpop.f32.mrf.mxu0  ;;  %v723_v37 = vpop.f32.mrf.mxu1 }
  0xe9   : > { %1071 = vst [vmem:[%s1663_s7] sm:$0xff] %v1007_v34  ;;  %1103 = vst [vmem:[%s1663_s7 + $0x100] sm:$0xff] %v1039_v35  ;;  %v1008_v38 = vadd.f32 %v1659_v31, %v643_v36  ;;  %v1040_v39 = vadd.f32 %v1659_v31, %v723_v37 }
  0xea   : > { %v645_v40 = vpop.f32.mrf.mxu0  ;;  %v725_v41 = vpop.f32.mrf.mxu1 }
  0xeb   : > { %1072 = vst [vmem:[%s1663_s7 + $0x8] sm:$0xff] %v1008_v38  ;;  %1104 = vst [vmem:[%s1663_s7 + $0x108] sm:$0xff] %v1040_v39  ;;  %v1009_v42 = vadd.f32 %v1657_v30, %v645_v40  ;;  %v1041_v43 = vadd.f32 %v1657_v30, %v725_v41 }
  0xec   : > { %v647_v44 = vpop.f32.mrf.mxu0  ;;  %v727_v45 = vpop.f32.mrf.mxu1 }
  0xed   : > { %1073 = vst [vmem:[%s1663_s7 + $0x10] sm:$0xff] %v1009_v42  ;;  %1105 = vst [vmem:[%s1663_s7 + $0x110] sm:$0xff] %v1041_v43  ;;  %v1010_v46 = vadd.f32 %v1659_v31, %v647_v44  ;;  %v1042_v47 = vadd.f32 %v1659_v31, %v727_v45 }
  0xee   : > { %v651_v48 = vpop.f32.mrf.mxu0  ;;  %v731_v49 = vpop.f32.mrf.mxu1 }
  0xef   : > { %1074 = vst [vmem:[%s1663_s7 + $0x18] sm:$0xff] %v1010_v46  ;;  %1106 = vst [vmem:[%s1663_s7 + $0x118] sm:$0xff] %v1042_v47  ;;  %v1011_v50 = vadd.f32 %v1657_v30, %v651_v48  ;;  %v1043_v51 = vadd.f32 %v1657_v30, %v731_v49 }
  0xf0   : > { %v653_v52 = vpop.f32.mrf.mxu0  ;;  %v733_v53 = vpop.f32.mrf.mxu1 }
  0xf1   : > { %1075 = vst [vmem:[%s1663_s7 + $0x20] sm:$0xff] %v1011_v50  ;;  %1107 = vst [vmem:[%s1663_s7 + $0x120] sm:$0xff] %v1043_v51  ;;  %v1012_v54 = vadd.f32 %v1659_v31, %v653_v52  ;;  %v1044_v55 = vadd.f32 %v1659_v31, %v733_v53 }
  0xf2   : > { %v655_v56 = vpop.f32.mrf.mxu0  ;;  %v735_v57 = vpop.f32.mrf.mxu1 }
  0xf3   : > { %1076 = vst [vmem:[%s1663_s7 + $0x28] sm:$0xff] %v1012_v54  ;;  %1108 = vst [vmem:[%s1663_s7 + $0x128] sm:$0xff] %v1044_v55  ;;  %v1013_v58 = vadd.f32 %v1657_v30, %v655_v56  ;;  %v1045_v59 = vadd.f32 %v1657_v30, %v735_v57 }
  0xf4   : > { %v657_v60 = vpop.f32.mrf.mxu0  ;;  %v737_v61 = vpop.f32.mrf.mxu1 }
  0xf5   : > { %1077 = vst [vmem:[%s1663_s7 + $0x30] sm:$0xff] %v1013_v58  ;;  %1109 = vst [vmem:[%s1663_s7 + $0x130] sm:$0xff] %v1045_v59  ;;  %v1014_v62 = vadd.f32 %v1659_v31, %v657_v60  ;;  %v1046_v63 = vadd.f32 %v1659_v31, %v737_v61 }
  0xf6   : > { %v661_v0 = vpop.f32.mrf.mxu0  ;;  %v741_v1 = vpop.f32.mrf.mxu1 }
  0xf7   : > { %1078 = vst [vmem:[%s1663_s7 + $0x38] sm:$0xff] %v1014_v62  ;;  %1110 = vst [vmem:[%s1663_s7 + $0x138] sm:$0xff] %v1046_v63  ;;  %v1015_v2 = vadd.f32 %v1657_v30, %v661_v0  ;;  %v1047_v3 = vadd.f32 %v1657_v30, %v741_v1 }
  0xf8   : > { %v663_v4 = vpop.f32.mrf.mxu0  ;;  %v743_v5 = vpop.f32.mrf.mxu1 }
  0xf9   : > { %1079 = vst [vmem:[%s1663_s7 + $0x40] sm:$0xff] %v1015_v2  ;;  %1111 = vst [vmem:[%s1663_s7 + $0x140] sm:$0xff] %v1047_v3  ;;  %v1016_v6 = vadd.f32 %v1659_v31, %v663_v4  ;;  %v1048_v7 = vadd.f32 %v1659_v31, %v743_v5 }
  0xfa   : > { %v665_v8 = vpop.f32.mrf.mxu0  ;;  %v745_v9 = vpop.f32.mrf.mxu1 }
  0xfb   : > { %1080 = vst [vmem:[%s1663_s7 + $0x48] sm:$0xff] %v1016_v6  ;;  %1112 = vst [vmem:[%s1663_s7 + $0x148] sm:$0xff] %v1048_v7  ;;  %v1017_v10 = vadd.f32 %v1657_v30, %v665_v8  ;;  %v1049_v11 = vadd.f32 %v1657_v30, %v745_v9 }
  0xfc   : > { %v667_v12 = vpop.f32.mrf.mxu0  ;;  %v747_v13 = vpop.f32.mrf.mxu1 }
  0xfd   : > { %1081 = vst [vmem:[%s1663_s7 + $0x50] sm:$0xff] %v1017_v10  ;;  %1113 = vst [vmem:[%s1663_s7 + $0x150] sm:$0xff] %v1049_v11  ;;  %v1018_v14 = vadd.f32 %v1659_v31, %v667_v12  ;;  %v1050_v15 = vadd.f32 %v1659_v31, %v747_v13 }
  0xfe   : > { %v671_v16 = vpop.f32.mrf.mxu0  ;;  %v751_v17 = vpop.f32.mrf.mxu1 }
  0xff   : > { %1082 = vst [vmem:[%s1663_s7 + $0x58] sm:$0xff] %v1018_v14  ;;  %1114 = vst [vmem:[%s1663_s7 + $0x158] sm:$0xff] %v1050_v15  ;;  %v1019_v18 = vadd.f32 %v1657_v30, %v671_v16  ;;  %v1051_v19 = vadd.f32 %v1657_v30, %v751_v17 }
 0x100   : > { %v673_v20 = vpop.f32.mrf.mxu0  ;;  %v753_v21 = vpop.f32.mrf.mxu1 }
 0x101   : > { %1083 = vst [vmem:[%s1663_s7 + $0x60] sm:$0xff] %v1019_v18  ;;  %1115 = vst [vmem:[%s1663_s7 + $0x160] sm:$0xff] %v1051_v19  ;;  %v1020_v22 = vadd.f32 %v1659_v31, %v673_v20  ;;  %v1052_v23 = vadd.f32 %v1659_v31, %v753_v21 }
 0x102   : > { %v675_v24 = vpop.f32.mrf.mxu0  ;;  %v755_v25 = vpop.f32.mrf.mxu1 }
 0x103   : > { %1084 = vst [vmem:[%s1663_s7 + $0x68] sm:$0xff] %v1020_v22  ;;  %1116 = vst [vmem:[%s1663_s7 + $0x168] sm:$0xff] %v1052_v23  ;;  %v1021_v26 = vadd.f32 %v1657_v30, %v675_v24  ;;  %v1053_v27 = vadd.f32 %v1657_v30, %v755_v25 }
 0x104   : > { %v677_v28 = vpop.f32.mrf.mxu0  ;;  %v757_v29 = vpop.f32.mrf.mxu1 }
 0x105   : > { %1085 = vst [vmem:[%s1663_s7 + $0x70] sm:$0xff] %v1021_v26  ;;  %1117 = vst [vmem:[%s1663_s7 + $0x170] sm:$0xff] %v1053_v27  ;;  %v1022_v32 = vadd.f32 %v1659_v31, %v677_v28  ;;  %v1054_v33 = vadd.f32 %v1659_v31, %v757_v29 }
 0x106   : > { %v681_v34 = vpop.f32.mrf.mxu0  ;;  %v761_v35 = vpop.f32.mrf.mxu1 }
 0x107   : > { %1086 = vst [vmem:[%s1663_s7 + $0x78] sm:$0xff] %v1022_v32  ;;  %1118 = vst [vmem:[%s1663_s7 + $0x178] sm:$0xff] %v1054_v33  ;;  %v1023_v36 = vadd.f32 %v1657_v30, %v681_v34  ;;  %v1055_v37 = vadd.f32 %v1657_v30, %v761_v35 }
 0x108   : > { %v683_v38 = vpop.f32.mrf.mxu0  ;;  %v763_v39 = vpop.f32.mrf.mxu1 }
 0x109   : > { %1087 = vst [vmem:[%s1663_s7 + $0x80] sm:$0xff] %v1023_v36  ;;  %1119 = vst [vmem:[%s1663_s7 + $0x180] sm:$0xff] %v1055_v37  ;;  %v1024_v40 = vadd.f32 %v1659_v31, %v683_v38  ;;  %v1056_v41 = vadd.f32 %v1659_v31, %v763_v39 }
 0x10a   : > { %v685_v42 = vpop.f32.mrf.mxu0  ;;  %v765_v43 = vpop.f32.mrf.mxu1 }
 0x10b   : > { %1088 = vst [vmem:[%s1663_s7 + $0x88] sm:$0xff] %v1024_v40  ;;  %1120 = vst [vmem:[%s1663_s7 + $0x188] sm:$0xff] %v1056_v41  ;;  %v1025_v44 = vadd.f32 %v1657_v30, %v685_v42  ;;  %v1057_v45 = vadd.f32 %v1657_v30, %v765_v43 }
 0x10c   : > { %v687_v46 = vpop.f32.mrf.mxu0  ;;  %v767_v47 = vpop.f32.mrf.mxu1 }
 0x10d   : > { %1089 = vst [vmem:[%s1663_s7 + $0x90] sm:$0xff] %v1025_v44  ;;  %1121 = vst [vmem:[%s1663_s7 + $0x190] sm:$0xff] %v1057_v45  ;;  %v1026_v48 = vadd.f32 %v1659_v31, %v687_v46  ;;  %v1058_v49 = vadd.f32 %v1659_v31, %v767_v47 }
 0x10e   : > { %v691_v50 = vpop.f32.mrf.mxu0  ;;  %v771_v51 = vpop.f32.mrf.mxu1 }
 0x10f   : > { %1090 = vst [vmem:[%s1663_s7 + $0x98] sm:$0xff] %v1026_v48  ;;  %1122 = vst [vmem:[%s1663_s7 + $0x198] sm:$0xff] %v1058_v49  ;;  %v1027_v52 = vadd.f32 %v1657_v30, %v691_v50  ;;  %v1059_v53 = vadd.f32 %v1657_v30, %v771_v51 }
 0x110   : > { %v693_v54 = vpop.f32.mrf.mxu0  ;;  %v773_v55 = vpop.f32.mrf.mxu1 }
 0x111   : > { %1091 = vst [vmem:[%s1663_s7 + $0xa0] sm:$0xff] %v1027_v52  ;;  %1123 = vst [vmem:[%s1663_s7 + $0x1a0] sm:$0xff] %v1059_v53  ;;  %v1028_v56 = vadd.f32 %v1659_v31, %v693_v54  ;;  %v1060_v57 = vadd.f32 %v1659_v31, %v773_v55 }
 0x112   : > { %v695_v58 = vpop.f32.mrf.mxu0  ;;  %v775_v59 = vpop.f32.mrf.mxu1 }
 0x113   : > { %1092 = vst [vmem:[%s1663_s7 + $0xa8] sm:$0xff] %v1028_v56  ;;  %1124 = vst [vmem:[%s1663_s7 + $0x1a8] sm:$0xff] %v1060_v57  ;;  %v1029_v60 = vadd.f32 %v1657_v30, %v695_v58  ;;  %v1061_v61 = vadd.f32 %v1657_v30, %v775_v59 }
 0x114   : > { %v697_v62 = vpop.f32.mrf.mxu0  ;;  %v777_v63 = vpop.f32.mrf.mxu1 }
 0x115   : > { %1093 = vst [vmem:[%s1663_s7 + $0xb0] sm:$0xff] %v1029_v60  ;;  %1125 = vst [vmem:[%s1663_s7 + $0x1b0] sm:$0xff] %v1061_v61  ;;  %v1030_v0 = vadd.f32 %v1659_v31, %v697_v62  ;;  %v1062_v1 = vadd.f32 %v1659_v31, %v777_v63 }
 0x116   : > { %v701_v2 = vpop.f32.mrf.mxu0  ;;  %v781_v3 = vpop.f32.mrf.mxu1 }
 0x117   : > { %1094 = vst [vmem:[%s1663_s7 + $0xb8] sm:$0xff] %v1030_v0  ;;  %1126 = vst [vmem:[%s1663_s7 + $0x1b8] sm:$0xff] %v1062_v1  ;;  %v1031_v4 = vadd.f32 %v1657_v30, %v701_v2  ;;  %v1063_v5 = vadd.f32 %v1657_v30, %v781_v3 }
 0x118   : > { %v703_v6 = vpop.f32.mrf.mxu0  ;;  %v783_v7 = vpop.f32.mrf.mxu1 }
 0x119   : > { %1095 = vst [vmem:[%s1663_s7 + $0xc0] sm:$0xff] %v1031_v4  ;;  %1127 = vst [vmem:[%s1663_s7 + $0x1c0] sm:$0xff] %v1063_v5  ;;  %v1032_v8 = vadd.f32 %v1659_v31, %v703_v6  ;;  %v1064_v9 = vadd.f32 %v1659_v31, %v783_v7 }
 0x11a   : > { %v705_v10 = vpop.f32.mrf.mxu0  ;;  %v785_v11 = vpop.f32.mrf.mxu1 }
 0x11b   : > { %1096 = vst [vmem:[%s1663_s7 + $0xc8] sm:$0xff] %v1032_v8  ;;  %1128 = vst [vmem:[%s1663_s7 + $0x1c8] sm:$0xff] %v1064_v9  ;;  %v1033_v12 = vadd.f32 %v1657_v30, %v705_v10  ;;  %v1065_v13 = vadd.f32 %v1657_v30, %v785_v11 }
 0x11c   : > { %v707_v14 = vpop.f32.mrf.mxu0  ;;  %v787_v15 = vpop.f32.mrf.mxu1 }
 0x11d   : > { %1097 = vst [vmem:[%s1663_s7 + $0xd0] sm:$0xff] %v1033_v12  ;;  %1129 = vst [vmem:[%s1663_s7 + $0x1d0] sm:$0xff] %v1065_v13  ;;  %v1034_v16 = vadd.f32 %v1659_v31, %v707_v14  ;;  %v1066_v17 = vadd.f32 %v1659_v31, %v787_v15 }
 0x11e   : > { %v711_v18 = vpop.f32.mrf.mxu0  ;;  %v791_v19 = vpop.f32.mrf.mxu1 }
 0x11f   : > { %1098 = vst [vmem:[%s1663_s7 + $0xd8] sm:$0xff] %v1034_v16  ;;  %1130 = vst [vmem:[%s1663_s7 + $0x1d8] sm:$0xff] %v1066_v17  ;;  %v1035_v20 = vadd.f32 %v1657_v30, %v711_v18  ;;  %v1067_v21 = vadd.f32 %v1657_v30, %v791_v19 }
 0x120   : > { %v713_v22 = vpop.f32.mrf.mxu0  ;;  %v793_v23 = vpop.f32.mrf.mxu1 }
 0x121   : > { %1099 = vst [vmem:[%s1663_s7 + $0xe0] sm:$0xff] %v1035_v20  ;;  %1131 = vst [vmem:[%s1663_s7 + $0x1e0] sm:$0xff] %v1067_v21  ;;  %v1036_v24 = vadd.f32 %v1659_v31, %v713_v22  ;;  %v1068_v25 = vadd.f32 %v1659_v31, %v793_v23 }
 0x122   : > { %v715_v26 = vpop.f32.mrf.mxu0  ;;  %v795_v27 = vpop.f32.mrf.mxu1 }
 0x123   : > { %1100 = vst [vmem:[%s1663_s7 + $0xe8] sm:$0xff] %v1036_v24  ;;  %1132 = vst [vmem:[%s1663_s7 + $0x1e8] sm:$0xff] %v1068_v25  ;;  %v1037_v28 = vadd.f32 %v1657_v30, %v715_v26  ;;  %v1069_v29 = vadd.f32 %v1657_v30, %v795_v27 }
 0x124   : > { %v717_v32 = vpop.f32.mrf.mxu0  ;;  %v797_v33 = vpop.f32.mrf.mxu1 }
 0x125   : > { %1101 = vst [vmem:[%s1663_s7 + $0xf0] sm:$0xff] %v1037_v28  ;;  %1133 = vst [vmem:[%s1663_s7 + $0x1f0] sm:$0xff] %v1069_v29  ;;  %v1038_v34 = vadd.f32 %v1659_v31, %v717_v32  ;;  %v1070_v35 = vadd.f32 %v1659_v31, %v797_v33 }
 0x127   : > { %1102 = vst [vmem:[%s1663_s7 + $0xf8] sm:$0xff] %v1038_v34  ;;  %1134 = vst [vmem:[%s1663_s7 + $0x1f8] sm:$0xff] %v1070_v35 }
 0x128   : > { %1429 = shalt.err (!%p1426_p5)
}
 0x129   : > { %s1430_s27 = scalar_lea.hbm %s1790_s18, 8192  ;;  %s1434_s30 = scalar_lea.hbm %s1850_s3, 16384 }
 0x12a   : > { %p1431_p6 = scmp.ne.s32.totalorder %s1790_s18, %s1430_s27  ;;  %p1435_p10 = scmp.lt.s32.totalorder %s1790_s18, %s1850_s3 }
 0x12b   : > { %p1436_p11 = scmp.lt.s32.totalorder %s1434_s30, %s1430_s27 }
 0x12c   : > { %p1432_p7 = pnand %p1431_p6, %p1558_p4 }
 0x12d   : > { %p1437_p12 = por %p1436_p11, %p1435_p10 }
 0x12e   : > { %p1433_p9 = pneg %p1432_p7 }
 0x130   : > { %p1438_p13 = pnand %p1437_p12, %p1433_p9 }
 0x132   : > { %1441 = shalt.err (!%p1438_p13)
}
 0x133   : > { %s1496_s6 = smov 256   ;;  %s1497_s7 = smov 16  }
 0x134   : > { %1330 = dma.vmem_to_hbm [thread:$0]  (%p1558_p4), %s1792_s9, 8192, %s1790_s18, %s1802_s15, %s1496_s6, %s1496_s6, %s1497_s7  }
 0x135 PF: > { %p1336_p0 = scmp.ge.s32.totalorder %s1492_s17, 2  ;;  %s1167_s8 = sand.u32 1, %s1472_s12  }
 0x136   : > { %s1168_s10 = scalar_lea.sflag [#allocation4], %s1167_s8 }
 0x137   : > { %p1333_p1 = pnand %p1336_p0, %p1565_p8 }
 0x139   : > { %p1334_p2 = pneg %p1333_p1 }
 0x13b   : > { %1467 = dma.done.wait (%p1334_p2), %s1168_s10, 8192  }
 0x13c   : > { %1469 = vsyncadd (%p1334_p2), %s1168_s10, 4294959104  ;;  %s16_s17 = sadd.s32 1, %s1492_s17   ;;  %s1853_s12 = smov %s1476_s13 }
 0x13d   : > { %p13_p3 = scmp.ge.s32.totalorder %s16_s17, 4   ;;  %s1854_s13 = smov %s1480_s14 }
 0x13e   : > { %s1855_s14 = smov %s1571_s25  ;;  %s1856_s15 = smov %s1488_s16 }
 0x13f   : > { %s1857_s16 = smov %s1859_s20  ;;  %15 = sbr.rel (!%p13_p3) target bundleno = 4 (0x4), region = 81 }
 0x144   :  { %1173 = vsyncpa [#allocation4], 1 }
 0x145   :  { %1175 = vsyncpa [#allocation4 + $0x1], 1 }

</bundles_post_ra>
